<compile_context>
chip_gen: v7x
topology: tpu7x:2x2x1
jax: 0.10.0
libtpu: 0.0.40
codegen_flags: <defaults>
</compile_context>

<pallas_src>
import jax
import jax.numpy as jnp
from jax.experimental import pallas as pl
from jax.experimental.pallas import tpu as pltpu

LANE = 128
_FAST_PATH_BYTES = 512 * 1024       # below this: whole array as one block
_DEFAULT_VMEM_CAP = 64 << 20        # most conservative (v7x per-TensorCore VMEM)


def _exp_kernel(x_ref, o_ref):
    # Elementwise exp on the current VMEM tile (EUP transcendental slot).
    o_ref[...] = jnp.exp(x_ref[...])


def _vmem_capacity_bytes() -> int:
    try:
        cap = getattr(pltpu.get_tpu_info(), "vmem_capacity_bytes", None)
        if cap:
            return int(cap)
    except Exception:
        pass
    return _DEFAULT_VMEM_CAP


def _select_block_bytes(vmem_cap: int) -> int:
    # in + out, double-buffered => footprint ~= 4 * block. Keep well under VMEM.
    if vmem_cap >= (128 << 20):
        return 16 << 20   # v5e / v6e: 64 MiB footprint out of 128 MiB
    return 8 << 20        # v7x: 32 MiB footprint out of 64 MiB (+ headroom)


def _compiler_params(block_bytes: int, vmem_cap: int, grid_len: int):
    return pltpu.CompilerParams(
        dimension_semantics=(pltpu.PARALLEL,) * grid_len,
        vmem_limit_bytes=min(vmem_cap, 4 * block_bytes + (16 << 20)),
    )


def _sublane_pack(itemsize: int) -> int:
    # Native sublane packing: f32 -> 8, bf16/f16 -> 16, int8/fp8 -> 32.
    return max(8, 32 // max(1, itemsize))


def _round_up(x: int, m: int) -> int:
    return ((x + m - 1) // m) * m


def _tile_rows(rows: int, itemsize: int, block_bytes: int) -> int:
    """Pick a sublane-aligned row-tile: big enough to amortize the per-step
    overhead, small enough to give >=4 blocks (DMA overlap + core split)."""
    pack = _sublane_pack(itemsize)
    cap = max(pack, (block_bytes // (LANE * itemsize)) // pack * pack)
    tr = min(cap, max(pack, (rows // 4) // pack * pack))
    nb = pl.cdiv(rows, tr)
    if nb >= 3 and nb % 2 == 1:
        # Prefer an even block count so a 2-TensorCore (v7x) split is balanced.
        tr2 = max(pack, _round_up(pl.cdiv(rows, nb + 1), pack))
        if pl.cdiv(rows, tr2) % 2 == 0:
            tr = tr2
    return tr


def _exponential_impl(x: jax.Array, donate_input: bool = False) -> jax.Array:
    """y = exp(x), elementwise, same shape/dtype as x."""
    orig_shape = x.shape
    dtype = x.dtype
    n = x.size
    if n == 0:
        return x

    itemsize = jnp.dtype(dtype).itemsize
    total_bytes = n * itemsize
    vmem_cap = _vmem_capacity_bytes()
    block_bytes = _select_block_bytes(vmem_cap)
    io_alias = {0: 0} if donate_input else {}

    if n % LANE == 0:
        # ---- Common case: lane-dense (rows, 128) slab, zero extra copies. ----
        rows = n // LANE
        x2d = x.reshape(rows, LANE)

        if total_bytes <= _FAST_PATH_BYTES:
            # Tiny tensor: one full-array block, no grid-step overhead.
            y2d = pl.pallas_call(
                _exp_kernel,
                out_shape=jax.ShapeDtypeStruct((rows, LANE), dtype),
                grid=(1,),
                in_specs=[pl.BlockSpec((rows, LANE), lambda i: (0, 0))],
                out_specs=pl.BlockSpec((rows, LANE), lambda i: (0, 0)),
                compiler_params=_compiler_params(total_bytes, vmem_cap, 1),
                input_output_aliases=io_alias,
            )(x2d)
        else:
            # Tiled streaming path: big blocks, cdiv grid, masked partial tail.
            tr = _tile_rows(rows, itemsize, block_bytes)
            grid = (pl.cdiv(rows, tr),)
            y2d = pl.pallas_call(
                _exp_kernel,
                out_shape=jax.ShapeDtypeStruct((rows, LANE), dtype),
                grid=grid,
                in_specs=[pl.BlockSpec((tr, LANE), lambda i: (i, 0))],
                out_specs=pl.BlockSpec((tr, LANE), lambda i: (i, 0)),
                compiler_params=_compiler_params(tr * LANE * itemsize, vmem_cap, 1),
                input_output_aliases=io_alias,
            )(x2d)
        return y2d.reshape(orig_shape)

    # ---- Uncommon case: n not a multiple of 128. No pad / trim copies. -------
    if total_bytes <= _FAST_PATH_BYTES:
        # Whole array as one (1, n) block: divisibility rule waived for full dims.
        x2d = x.reshape(1, n)
        y2d = pl.pallas_call(
            _exp_kernel,
            out_shape=jax.ShapeDtypeStruct((1, n), dtype),
            grid=(1,),
            in_specs=[pl.BlockSpec((1, n), lambda i: (0, 0))],
            out_specs=pl.BlockSpec((1, n), lambda i: (0, 0)),
            compiler_params=_compiler_params(total_bytes, vmem_cap, 1),
            input_output_aliases=io_alias,
        )(x2d)
        return y2d.reshape(orig_shape)

    # Large non-128-divisible tensor (rare): flat 1-D blocks, Pallas masks the
    # partial last block. Modest block size since rank-1 VMEM layout may pad
    # sublane-wise; this path never pays pad/trim HBM traffic.
    x1d = x.reshape(-1)
    blk_elems = max(8 * LANE,
                    (min(block_bytes // 8, 1 << 20) // itemsize)
                    // (8 * LANE) * (8 * LANE))
    grid = (pl.cdiv(n, blk_elems),)
    y1d = pl.pallas_call(
        _exp_kernel,
        out_shape=jax.ShapeDtypeStruct((n,), dtype),
        grid=grid,
        in_specs=[pl.BlockSpec((blk_elems,), lambda i: (i,))],
        out_specs=pl.BlockSpec((blk_elems,), lambda i: (i,)),
        compiler_params=_compiler_params(blk_elems * itemsize * 8, vmem_cap, 1),
        input_output_aliases=io_alias,
    )(x1d)
    return y1d.reshape(orig_shape)


# jit the wrapper so reshapes stay layout-preserving bitcasts and no extra HBM
# intermediates materialize around the pallas_call.
exponential = jax.jit(_exponential_impl, static_argnames=("donate_input",))


if __name__ == "__main__":
    key = jax.random.PRNGKey(0)
    k0, k1, k2, k3 = jax.random.split(key, 4)

    # 1) Required small NCHW-like input (single-block fast path).
    x_small = jax.random.normal(k0, (2, 4, 16, 16), dtype=jnp.float32)
    y_small = exponential(x_small)
    jax.block_until_ready(y_small)
    assert y_small.shape == x_small.shape and y_small.dtype == x_small.dtype
    assert jnp.allclose(y_small, jnp.exp(x_small), rtol=1e-6, atol=1e-6)

    # 2) Larger f32 input: tiled streaming path with an even block count and a
    #    masked partial last block (rows not divisible by the tile).
    x_big = jax.random.normal(k1, (5, 317, 512), dtype=jnp.float32)   # ~3.1 MiB
    y_big = exponential(x_big)
    jax.block_until_ready(y_big)
    assert jnp.allclose(y_big, jnp.exp(x_big), rtol=1e-6, atol=1e-6)

    # 3) bf16 input: exercises the dtype-aware sublane packing (16) in tiling.
    x_bf16 = jax.random.normal(k2, (8, 256, 256), dtype=jnp.bfloat16)  # 1 MiB
    y_bf16 = exponential(x_bf16)
    jax.block_until_ready(y_bf16)
    assert jnp.allclose(y_bf16.astype(jnp.float32),
                        jnp.exp(x_bf16).astype(jnp.float32),
                        rtol=2e-2, atol=2e-2)

    # 4) Non-128-divisible size: pad-free full-array (1, n) block path.
    x_odd = jax.random.normal(k3, (3, 5, 7), dtype=jnp.float32)
    y_odd = exponential(x_odd)
    jax.block_until_ready(y_odd)
    assert y_odd.shape == x_odd.shape
    assert jnp.allclose(y_odd, jnp.exp(x_odd), rtol=1e-6, atol=1e-6)

    print("KERNEL_OK")
</pallas_src>

<mosaic_0001>
module attributes {stable_mosaic.version = 11 : i64} {
  func.func @_exp_kernel(%arg0: i32, %arg1: memref<16x128xf32, #tpu.memory_space<vmem>>, %arg2: memref<16x128xf32, #tpu.memory_space<vmem>>) attributes {dimension_semantics = [#tpu.dimension_semantics<parallel>], iteration_bounds = array<i64: 1>, scalar_prefetch = 0 : i64, scratch_operands = 0 : i64, tpu.core_type = #tpu.core_type<tc>, window_params = [{pipeline_mode = #tpu.pipeline_mode<synchronous>, transform_indices = @transform_0, window_bounds = array<i64: 16, 128>}, {pipeline_mode = #tpu.pipeline_mode<synchronous>, transform_indices = @transform_1, window_bounds = array<i64: 16, 128>}]} {
    %c0 = arith.constant 0 : index
    %c0_0 = arith.constant 0 : index
    %0 = vector.load %arg1[%c0, %c0_0] : memref<16x128xf32, #tpu.memory_space<vmem>>, vector<16x128xf32>
    %1 = math.exp %0 : vector<16x128xf32>
    %c0_1 = arith.constant 0 : index
    %c0_2 = arith.constant 0 : index
    %2 = vector.load %arg2[%c0_1, %c0_2] : memref<16x128xf32, #tpu.memory_space<vmem>>, vector<16x128xf32>
    tpu.vector_store %arg2[%c0_1, %c0_2], %1 {strides = array<i32>} : memref<16x128xf32, #tpu.memory_space<vmem>>, vector<16x128xf32>,
    return
  }
  func.func @transform_0(%arg0: i32) -> (i32, i32) {
    %c0_i32 = arith.constant 0 : i32
    %c0_i32_0 = arith.constant 0 : i32
    %c0_i32_1 = arith.constant 0 : i32
    return %c0_i32, %c0_i32_0 : i32, i32
  }
  func.func @transform_1(%arg0: i32) -> (i32, i32) {
    %c0_i32 = arith.constant 0 : i32
    %c0_i32_0 = arith.constant 0 : i32
    %c0_i32_1 = arith.constant 0 : i32
    return %c0_i32, %c0_i32_0 : i32, i32
  }
}

</mosaic_0001>

<bundles_post_ra>
// kernel: _exponential_impl.1
= control target key start
LH: loop header
LB: loop body
LE: loop exit
PB: predicated region body
PF: predicated region fallthrough
CT: control target
= control target key end

     0   :  { %s46_s0 = inlined_call_operand.vmem [shape: f32[16,128], index: 0, kind: input, shape index: {}]   ;;  %s47_s1 = inlined_call_operand.vmem [shape: f32[16,128], index: 1, kind: output, shape index: {}]  }
   0x1   :  { %v8_v0 = vld [vmem:[%s46_s0] sm:$0xff]  ;;  %v9_v1 = vld [vmem:[%s46_s0 + $0x8] sm:$0xff] }
   0x2   :  { %v10_v2 = vmul.f32 1.442695, %v8_v0  ;;  %v12_v3 = vmul.f32 1.442695, %v9_v1 }
   0x4   :  { %20 = vpow2.f32 %v10_v2 }
   0x5   :  { %22 = vpow2.f32 %v12_v3 }
   0xe   :  { %v21_v4 = vpop.eup %20 }
   0xf   :  { %v23_v5 = vpop.eup %22  ;;  %14 = vst [vmem:[%s47_s1] sm:$0xff] %v21_v4 }
  0x10   :  { %15 = vst [vmem:[%s47_s1 + $0x8] sm:$0xff] %v23_v5 }

</bundles_post_ra>
